<compile_context>
chip_gen: v5e
topology: v5e:2x2
jax: 0.10.0
libtpu: 0.0.40
codegen_flags: <defaults>
</compile_context>

<pallas_src>
import jax
import jax.numpy as jnp
from jax import lax
from jax.experimental import pallas as pl
from jax.experimental.pallas import tpu as pltpu


def _round_up(x, m):
    return ((x + m - 1) // m) * m


def _pick_seq_chunk(S, requested):
    """Chunk must divide S and be a multiple of 8, else fall back to full S."""
    if requested is not None:
        c = int(requested)
        if 0 < c < S and S % c == 0 and c % 8 == 0:
            return c
        return S
    if S <= 128:
        return S
    for c in range(128, 7, -8):  # largest multiple-of-8 divisor <= 128
        if S % c == 0:
            return c
    return S


def _rnn_chunk_kernel(x_ref, wih_ref, whh_ref, b_ref, o_ref, proj_ref):
    """One (batch-tile, seq-chunk) grid step.

    x_ref    : (tb, T, Ep)  input chunk (streams in caller dtype)
    wih_ref  : (Ep, Ep)     W_ih^T, VMEM-resident
    whh_ref  : (Ep, Ep)     W_hh^T, VMEM-resident, float32
    b_ref    : (1, Ep)      b_ih + b_hh, float32
    o_ref    : (tb, Ep)     hidden-state carry / final output, float32
    proj_ref : (T, tb, Ep)  VMEM scratch for the per-chunk input projection
    """
    c = pl.program_id(1)

    # Initialize the hidden-state carry (held in the resident output block).
    @pl.when(c == 0)
    def _():
        o_ref[...] = jnp.zeros_like(o_ref)

    tb, T, E = x_ref.shape
    wih = wih_ref[...]
    whh = whh_ref[...]
    bias = b_ref[...]           # (1, E)

    # ---- Batched input projection (no serial dependence) --------------------
    # One (tb*T, E) @ (E, E) MXU pass.  E is a multiple of 128 (lane-dense) and
    # tb a multiple of 8, so collapsing the leading dims is layout-preserving
    # whenever T is a multiple of 8.  Bias fused once per chunk (2-D broadcast).
    x = x_ref[...]
    proj = jnp.dot(x.reshape(tb * T, E), wih,
                   preferred_element_type=jnp.float32) + bias
    proj = proj.reshape(tb, T, E)

    # Park the projection in a (T, tb, E) scratch: each timestep becomes a
    # leading-axis read and no chunk-sized value stays live across the serial
    # loop (bounds vreg pressure for long chunks).
    for t in range(T):
        proj_ref[t] = proj[:, t, :]

    # ---- Serial recurrence: h_t = tanh(proj_t + h_{t-1} @ W_hh^T) -----------
    h = o_ref[...]
    if T <= 32:
        # Fully unrolled: the LLO scheduler can overlap loads with the serial
        # tanh/dot chain.
        for t in range(T):
            h = jnp.tanh(proj_ref[t]
                         + jnp.dot(h, whh, preferred_element_type=jnp.float32))
    else:
        def step(t, h_carry):
            return jnp.tanh(proj_ref[t]
                            + jnp.dot(h_carry, whh,
                                      preferred_element_type=jnp.float32))
        h = lax.fori_loop(0, T, step, h)

    o_ref[...] = h


def requirement_net4_forward(dlg, w_ih, w_hh, b_ih, b_hh, *, seq_chunk=None):
    """RequirementNet4 forward: last hidden state of a 1-layer tanh RNN.

    dlg:   (batch, seq, emb)
    w_ih:  (emb, emb)   PyTorch layout (hidden, input)
    w_hh:  (emb, emb)
    b_ih, b_hh: (emb,)
    Returns (batch, emb) float32.
    """
    B, S, E = dlg.shape
    if S == 0:
        raise ValueError("sequence length must be >= 1")

    # ---- Lane/sublane-dense padding -----------------------------------------
    Ep = _round_up(E, 128)             # lane-dense hidden dim
    Bp = _round_up(B, 8)               # sublane-full batch
    if Bp > 128:
        Bp = _round_up(Bp, 128)
        tb = 128                       # batch tile: rows per MXU pass / per core
    else:
        tb = Bp
    n_btiles = Bp // tb

    # ---- Sequence chunking ----------------------------------------------------
    seq_chunk = _pick_seq_chunk(S, seq_chunk)
    n_chunks = S // seq_chunk

    # ---- dtypes: stream x / W_ih in the caller's dtype (bf16 friendly); keep
    # the recurrence carry, bias and tanh in f32 on all chips.
    x_dtype = jnp.bfloat16 if dlg.dtype == jnp.bfloat16 else jnp.float32

    # Zero-padding keeps padded hidden columns exactly 0 through the whole
    # recurrence (tanh(0) == 0), so the real output columns are exact.
    x_p = jnp.pad(dlg.astype(x_dtype), ((0, Bp - B), (0, 0), (0, Ep - E)))
    wih_t = jnp.pad(jnp.transpose(w_ih).astype(jnp.float32),
                    ((0, Ep - E), (0, Ep - E))).astype(x_dtype)     # (in, hid)
    whh_t = jnp.pad(jnp.transpose(w_hh).astype(jnp.float32),
                    ((0, Ep - E), (0, Ep - E)))                     # (hid, hid)
    bias = jnp.pad((b_ih + b_hh).astype(jnp.float32), (0, Ep - E)).reshape(1, Ep)

    # ---- Explicit VMEM budget (v7x has only 64 MiB physical) -----------------
    xb = jnp.dtype(x_dtype).itemsize
    vmem_bytes = int(
        Ep * Ep * (xb + 4)                       # resident W_ih^T + W_hh^T
        + 2 * 2 * tb * seq_chunk * Ep * xb       # double-buffered x chunks
        + seq_chunk * tb * Ep * 4                # proj scratch
        + 2 * tb * Ep * 4                        # output / carry
        + 2 * Ep * 4                             # bias
    )
    vmem_limit = min(64 * 1024 * 1024,
                     max(32 * 1024 * 1024, int(vmem_bytes * 1.5)))

    grid_spec = pltpu.PrefetchScalarGridSpec(
        num_scalar_prefetch=0,
        grid=(n_btiles, n_chunks),
        in_specs=[
            # Slice the original (B, S, E) layout directly — no wrapper transpose.
            pl.BlockSpec((tb, seq_chunk, Ep), lambda b, c: (b, c, 0)),
            pl.BlockSpec((Ep, Ep), lambda b, c: (0, 0)),   # W_ih^T (resident)
            pl.BlockSpec((Ep, Ep), lambda b, c: (0, 0)),   # W_hh^T (resident)
            pl.BlockSpec((1, Ep), lambda b, c: (0, 0)),    # fused bias (resident)
        ],
        # Constant index over the chunk axis => the output block stays
        # VMEM-resident across the sequence and doubles as the hidden carry.
        out_specs=pl.BlockSpec((tb, Ep), lambda b, c: (b, 0)),
        scratch_shapes=[pltpu.VMEM((seq_chunk, tb, Ep), jnp.float32)],
    )

    out = pl.pallas_call(
        _rnn_chunk_kernel,
        out_shape=jax.ShapeDtypeStruct((Bp, Ep), jnp.float32),
        grid_spec=grid_spec,
        compiler_params=pltpu.CompilerParams(
            # Batch tiles are independent (megacore / v7x 2-TC sharding);
            # the sequence recurrence is serial.
            dimension_semantics=("parallel", "arbitrary"),
            vmem_limit_bytes=vmem_limit,
        ),
    )(x_p, wih_t, whh_t, bias)

    return out[:B, :E]


def _reference(dlg, w_ih, w_hh, b_ih, b_hh):
    """Pure-JAX reference matching nn.RNN forward (for sanity checking)."""
    x = jnp.transpose(dlg, (1, 0, 2))  # (S, B, E)
    B, E = x.shape[1], x.shape[2]
    h0 = jnp.zeros((B, E), jnp.float32)

    def step(h, x_t):
        h_new = jnp.tanh(x_t @ w_ih.T + b_ih + h @ w_hh.T + b_hh)
        return h_new, None

    h_last, _ = lax.scan(step, h0, x)
    return h_last


if __name__ == "__main__":
    # Small shapes: batch=2, seq=8, emb=32
    B, S, E = 2, 8, 32
    key = jax.random.PRNGKey(0)
    k_dlg, k_wih, k_whh, k_bih, k_bhh = jax.random.split(key, 5)

    dlg = jax.random.normal(k_dlg, (B, S, E), dtype=jnp.float32)
    # Deterministic init mimicking nn.RNN's uniform(-1/sqrt(H), 1/sqrt(H))
    bound = 1.0 / float(E) ** 0.5
    w_ih = jax.random.uniform(k_wih, (E, E), jnp.float32, -bound, bound)
    w_hh = jax.random.uniform(k_whh, (E, E), jnp.float32, -bound, bound)
    b_ih = jax.random.uniform(k_bih, (E,), jnp.float32, -bound, bound)
    b_hh = jax.random.uniform(k_bhh, (E,), jnp.float32, -bound, bound)

    out = requirement_net4_forward(dlg, w_ih, w_hh, b_ih, b_hh)
    out = jax.block_until_ready(out)

    ref = _reference(dlg, w_ih, w_hh, b_ih, b_hh)
    assert out.shape == (B, E)
    assert jnp.allclose(out, ref, atol=1e-5, rtol=1e-5), "mismatch vs reference"

    print("KERNEL_OK")
</pallas_src>

<mosaic_0001>
module attributes {stable_mosaic.version = 11 : i64} {
  func.func @_rnn_chunk_kernel(%arg0: i32, %arg1: i32, %arg2: memref<8x8x128xf32, #tpu.memory_space<vmem>>, %arg3: memref<128x128xf32, #tpu.memory_space<vmem>>, %arg4: memref<128x128xf32, #tpu.memory_space<vmem>>, %arg5: memref<1x128xf32, #tpu.memory_space<vmem>>, %arg6: memref<8x128xf32, #tpu.memory_space<vmem>>, %arg7: memref<8x8x128xf32, #tpu.memory_space<vmem>>) attributes {dimension_semantics = [#tpu.dimension_semantics<parallel>, #tpu.dimension_semantics<arbitrary>], iteration_bounds = array<i64: 1, 1>, scalar_prefetch = 0 : i64, scratch_operands = 1 : i64, tpu.core_type = #tpu.core_type<tc>, window_params = [{transform_indices = @transform_0, window_bounds = array<i64: 8, 8, 128>}, {pipeline_mode = #tpu.pipeline_mode<synchronous>, transform_indices = @transform_1, window_bounds = array<i64: 128, 128>}, {pipeline_mode = #tpu.pipeline_mode<synchronous>, transform_indices = @transform_2, window_bounds = array<i64: 128, 128>}, {pipeline_mode = #tpu.pipeline_mode<synchronous>, transform_indices = @transform_3, window_bounds = array<i64: 1, 128>}, {transform_indices = @transform_4, window_bounds = array<i64: 8, 128>}]} {
    %c0_i32 = arith.constant 0 : i32
    %0 = arith.cmpi eq, %arg1, %c0_i32 : i32
    %1 = arith.extui %0 : i1 to i32
    %c0_i32_0 = arith.constant 0 : i32
    %2 = arith.cmpi ne, %1, %c0_i32_0 : i32
    scf.if %2 {
      %cst_62 = arith.constant 0.000000e+00 : f32
      %94 = vector.broadcast %cst_62 : f32 to vector<8x128xf32>
      %c0_63 = arith.constant 0 : index
      %c0_64 = arith.constant 0 : index
      %95 = vector.load %arg6[%c0_63, %c0_64] : memref<8x128xf32, #tpu.memory_space<vmem>>, vector<8x128xf32>
      tpu.vector_store %arg6[%c0_63, %c0_64], %94 {strides = array<i32>} : memref<8x128xf32, #tpu.memory_space<vmem>>, vector<8x128xf32>,
    } else {
    }
    %c0 = arith.constant 0 : index
    %c0_1 = arith.constant 0 : index
    %3 = vector.load %arg3[%c0, %c0_1] : memref<128x128xf32, #tpu.memory_space<vmem>>, vector<128x128xf32>
    %c0_2 = arith.constant 0 : index
    %c0_3 = arith.constant 0 : index
    %4 = vector.load %arg4[%c0_2, %c0_3] : memref<128x128xf32, #tpu.memory_space<vmem>>, vector<128x128xf32>
    %c0_4 = arith.constant 0 : index
    %c0_5 = arith.constant 0 : index
    %5 = vector.load %arg5[%c0_4, %c0_5] : memref<1x128xf32, #tpu.memory_space<vmem>>, vector<1x128xf32>
    %c0_6 = arith.constant 0 : index
    %c0_7 = arith.constant 0 : index
    %c0_8 = arith.constant 0 : index
    %6 = vector.load %arg2[%c0_6, %c0_7, %c0_8] : memref<8x8x128xf32, #tpu.memory_space<vmem>>, vector<8x8x128xf32>
    %7 = vector.shape_cast %6 : vector<8x8x128xf32> to vector<64x128xf32>
    %cst = arith.constant dense<0.000000e+00> : vector<64x128xf32>
    %8 = tpu.matmul %7, %3, %cst {dimension_numbers = #tpu.dot_dimension_numbers<[1], [0], [0], [1], [0, 0, 1, 1], [], []>} : vector<64x128xf32>, vector<128x128xf32>, vector<64x128xf32> -> vector<64x128xf32>
    %9 = vector.broadcast %5 : vector<1x128xf32> to vector<64x128xf32>
    %10 = arith.addf %8, %9 : vector<64x128xf32>
    %11 = vector.shape_cast %10 : vector<64x128xf32> to vector<8x8x128xf32>
    %12 = vector.extract_strided_slice %11 {offsets = [0, 0, 0], sizes = [8, 1, 128], strides = [1, 1, 1]} : vector<8x8x128xf32> to vector<8x1x128xf32>
    %13 = vector.shape_cast %12 : vector<8x1x128xf32> to vector<8x128xf32>
    %c0_9 = arith.constant 0 : index
    %c0_10 = arith.constant 0 : index
    %c0_11 = arith.constant 0 : index
    %14 = vector.load %arg7[%c0_9, %c0_10, %c0_11] : memref<8x8x128xf32, #tpu.memory_space<vmem>>, vector<1x8x128xf32>
    %15 = vector.shape_cast %14 : vector<1x8x128xf32> to vector<8x128xf32>
    %16 = vector.shape_cast %13 : vector<8x128xf32> to vector<1x8x128xf32>
    tpu.vector_store %arg7[%c0_9, %c0_10, %c0_11], %16 {strides = array<i32>} : memref<8x8x128xf32, #tpu.memory_space<vmem>>, vector<1x8x128xf32>,
    %17 = vector.extract_strided_slice %11 {offsets = [0, 1, 0], sizes = [8, 1, 128], strides = [1, 1, 1]} : vector<8x8x128xf32> to vector<8x1x128xf32>
    %18 = vector.shape_cast %17 : vector<8x1x128xf32> to vector<8x128xf32>
    %c1 = arith.constant 1 : index
    %c0_12 = arith.constant 0 : index
    %c0_13 = arith.constant 0 : index
    %19 = vector.load %arg7[%c1, %c0_12, %c0_13] : memref<8x8x128xf32, #tpu.memory_space<vmem>>, vector<1x8x128xf32>
    %20 = vector.shape_cast %19 : vector<1x8x128xf32> to vector<8x128xf32>
    %21 = vector.shape_cast %18 : vector<8x128xf32> to vector<1x8x128xf32>
    tpu.vector_store %arg7[%c1, %c0_12, %c0_13], %21 {strides = array<i32>} : memref<8x8x128xf32, #tpu.memory_space<vmem>>, vector<1x8x128xf32>,
    %22 = vector.extract_strided_slice %11 {offsets = [0, 2, 0], sizes = [8, 1, 128], strides = [1, 1, 1]} : vector<8x8x128xf32> to vector<8x1x128xf32>
    %23 = vector.shape_cast %22 : vector<8x1x128xf32> to vector<8x128xf32>
    %c2 = arith.constant 2 : index
    %c0_14 = arith.constant 0 : index
    %c0_15 = arith.constant 0 : index
    %24 = vector.load %arg7[%c2, %c0_14, %c0_15] : memref<8x8x128xf32, #tpu.memory_space<vmem>>, vector<1x8x128xf32>
    %25 = vector.shape_cast %24 : vector<1x8x128xf32> to vector<8x128xf32>
    %26 = vector.shape_cast %23 : vector<8x128xf32> to vector<1x8x128xf32>
    tpu.vector_store %arg7[%c2, %c0_14, %c0_15], %26 {strides = array<i32>} : memref<8x8x128xf32, #tpu.memory_space<vmem>>, vector<1x8x128xf32>,
    %27 = vector.extract_strided_slice %11 {offsets = [0, 3, 0], sizes = [8, 1, 128], strides = [1, 1, 1]} : vector<8x8x128xf32> to vector<8x1x128xf32>
    %28 = vector.shape_cast %27 : vector<8x1x128xf32> to vector<8x128xf32>
    %c3 = arith.constant 3 : index
    %c0_16 = arith.constant 0 : index
    %c0_17 = arith.constant 0 : index
    %29 = vector.load %arg7[%c3, %c0_16, %c0_17] : memref<8x8x128xf32, #tpu.memory_space<vmem>>, vector<1x8x128xf32>
    %30 = vector.shape_cast %29 : vector<1x8x128xf32> to vector<8x128xf32>
    %31 = vector.shape_cast %28 : vector<8x128xf32> to vector<1x8x128xf32>
    tpu.vector_store %arg7[%c3, %c0_16, %c0_17], %31 {strides = array<i32>} : memref<8x8x128xf32, #tpu.memory_space<vmem>>, vector<1x8x128xf32>,
    %32 = vector.extract_strided_slice %11 {offsets = [0, 4, 0], sizes = [8, 1, 128], strides = [1, 1, 1]} : vector<8x8x128xf32> to vector<8x1x128xf32>
    %33 = vector.shape_cast %32 : vector<8x1x128xf32> to vector<8x128xf32>
    %c4 = arith.constant 4 : index
    %c0_18 = arith.constant 0 : index
    %c0_19 = arith.constant 0 : index
    %34 = vector.load %arg7[%c4, %c0_18, %c0_19] : memref<8x8x128xf32, #tpu.memory_space<vmem>>, vector<1x8x128xf32>
    %35 = vector.shape_cast %34 : vector<1x8x128xf32> to vector<8x128xf32>
    %36 = vector.shape_cast %33 : vector<8x128xf32> to vector<1x8x128xf32>
    tpu.vector_store %arg7[%c4, %c0_18, %c0_19], %36 {strides = array<i32>} : memref<8x8x128xf32, #tpu.memory_space<vmem>>, vector<1x8x128xf32>,
    %37 = vector.extract_strided_slice %11 {offsets = [0, 5, 0], sizes = [8, 1, 128], strides = [1, 1, 1]} : vector<8x8x128xf32> to vector<8x1x128xf32>
    %38 = vector.shape_cast %37 : vector<8x1x128xf32> to vector<8x128xf32>
    %c5 = arith.constant 5 : index
    %c0_20 = arith.constant 0 : index
    %c0_21 = arith.constant 0 : index
    %39 = vector.load %arg7[%c5, %c0_20, %c0_21] : memref<8x8x128xf32, #tpu.memory_space<vmem>>, vector<1x8x128xf32>
    %40 = vector.shape_cast %39 : vector<1x8x128xf32> to vector<8x128xf32>
    %41 = vector.shape_cast %38 : vector<8x128xf32> to vector<1x8x128xf32>
    tpu.vector_store %arg7[%c5, %c0_20, %c0_21], %41 {strides = array<i32>} : memref<8x8x128xf32, #tpu.memory_space<vmem>>, vector<1x8x128xf32>,
    %42 = vector.extract_strided_slice %11 {offsets = [0, 6, 0], sizes = [8, 1, 128], strides = [1, 1, 1]} : vector<8x8x128xf32> to vector<8x1x128xf32>
    %43 = vector.shape_cast %42 : vector<8x1x128xf32> to vector<8x128xf32>
    %c6 = arith.constant 6 : index
    %c0_22 = arith.constant 0 : index
    %c0_23 = arith.constant 0 : index
    %44 = vector.load %arg7[%c6, %c0_22, %c0_23] : memref<8x8x128xf32, #tpu.memory_space<vmem>>, vector<1x8x128xf32>
    %45 = vector.shape_cast %44 : vector<1x8x128xf32> to vector<8x128xf32>
    %46 = vector.shape_cast %43 : vector<8x128xf32> to vector<1x8x128xf32>
    tpu.vector_store %arg7[%c6, %c0_22, %c0_23], %46 {strides = array<i32>} : memref<8x8x128xf32, #tpu.memory_space<vmem>>, vector<1x8x128xf32>,
    %47 = vector.extract_strided_slice %11 {offsets = [0, 7, 0], sizes = [8, 1, 128], strides = [1, 1, 1]} : vector<8x8x128xf32> to vector<8x1x128xf32>
    %48 = vector.shape_cast %47 : vector<8x1x128xf32> to vector<8x128xf32>
    %c7 = arith.constant 7 : index
    %c0_24 = arith.constant 0 : index
    %c0_25 = arith.constant 0 : index
    %49 = vector.load %arg7[%c7, %c0_24, %c0_25] : memref<8x8x128xf32, #tpu.memory_space<vmem>>, vector<1x8x128xf32>
    %50 = vector.shape_cast %49 : vector<1x8x128xf32> to vector<8x128xf32>
    %51 = vector.shape_cast %48 : vector<8x128xf32> to vector<1x8x128xf32>
    tpu.vector_store %arg7[%c7, %c0_24, %c0_25], %51 {strides = array<i32>} : memref<8x8x128xf32, #tpu.memory_space<vmem>>, vector<1x8x128xf32>,
    %c0_26 = arith.constant 0 : index
    %c0_27 = arith.constant 0 : index
    %52 = vector.load %arg6[%c0_26, %c0_27] : memref<8x128xf32, #tpu.memory_space<vmem>>, vector<8x128xf32>
    %c0_28 = arith.constant 0 : index
    %c0_29 = arith.constant 0 : index
    %c0_30 = arith.constant 0 : index
    %53 = vector.load %arg7[%c0_28, %c0_29, %c0_30] : memref<8x8x128xf32, #tpu.memory_space<vmem>>, vector<1x8x128xf32>
    %54 = vector.shape_cast %53 : vector<1x8x128xf32> to vector<8x128xf32>
    %cst_31 = arith.constant dense<0.000000e+00> : vector<8x128xf32>
    %55 = tpu.matmul %52, %4, %cst_31 {dimension_numbers = #tpu.dot_dimension_numbers<[1], [0], [0], [1], [0, 0, 1, 1], [], []>} : vector<8x128xf32>, vector<128x128xf32>, vector<8x128xf32> -> vector<8x128xf32>
    %56 = arith.addf %54, %55 : vector<8x128xf32>
    %57 = math.tanh %56 : vector<8x128xf32>
    %c1_32 = arith.constant 1 : index
    %c0_33 = arith.constant 0 : index
    %c0_34 = arith.constant 0 : index
    %58 = vector.load %arg7[%c1_32, %c0_33, %c0_34] : memref<8x8x128xf32, #tpu.memory_space<vmem>>, vector<1x8x128xf32>
    %59 = vector.shape_cast %58 : vector<1x8x128xf32> to vector<8x128xf32>
    %cst_35 = arith.constant dense<0.000000e+00> : vector<8x128xf32>
    %60 = tpu.matmul %57, %4, %cst_35 {dimension_numbers = #tpu.dot_dimension_numbers<[1], [0], [0], [1], [0, 0, 1, 1], [], []>} : vector<8x128xf32>, vector<128x128xf32>, vector<8x128xf32> -> vector<8x128xf32>
    %61 = arith.addf %59, %60 : vector<8x128xf32>
    %62 = math.tanh %61 : vector<8x128xf32>
    %c2_36 = arith.constant 2 : index
    %c0_37 = arith.constant 0 : index
    %c0_38 = arith.constant 0 : index
    %63 = vector.load %arg7[%c2_36, %c0_37, %c0_38] : memref<8x8x128xf32, #tpu.memory_space<vmem>>, vector<1x8x128xf32>
    %64 = vector.shape_cast %63 : vector<1x8x128xf32> to vector<8x128xf32>
    %cst_39 = arith.constant dense<0.000000e+00> : vector<8x128xf32>
    %65 = tpu.matmul %62, %4, %cst_39 {dimension_numbers = #tpu.dot_dimension_numbers<[1], [0], [0], [1], [0, 0, 1, 1], [], []>} : vector<8x128xf32>, vector<128x128xf32>, vector<8x128xf32> -> vector<8x128xf32>
    %66 = arith.addf %64, %65 : vector<8x128xf32>
    %67 = math.tanh %66 : vector<8x128xf32>
    %c3_40 = arith.constant 3 : index
    %c0_41 = arith.constant 0 : index
    %c0_42 = arith.constant 0 : index
    %68 = vector.load %arg7[%c3_40, %c0_41, %c0_42] : memref<8x8x128xf32, #tpu.memory_space<vmem>>, vector<1x8x128xf32>
    %69 = vector.shape_cast %68 : vector<1x8x128xf32> to vector<8x128xf32>
    %cst_43 = arith.constant dense<0.000000e+00> : vector<8x128xf32>
    %70 = tpu.matmul %67, %4, %cst_43 {dimension_numbers = #tpu.dot_dimension_numbers<[1], [0], [0], [1], [0, 0, 1, 1], [], []>} : vector<8x128xf32>, vector<128x128xf32>, vector<8x128xf32> -> vector<8x128xf32>
    %71 = arith.addf %69, %70 : vector<8x128xf32>
    %72 = math.tanh %71 : vector<8x128xf32>
    %c4_44 = arith.constant 4 : index
    %c0_45 = arith.constant 0 : index
    %c0_46 = arith.constant 0 : index
    %73 = vector.load %arg7[%c4_44, %c0_45, %c0_46] : memref<8x8x128xf32, #tpu.memory_space<vmem>>, vector<1x8x128xf32>
    %74 = vector.shape_cast %73 : vector<1x8x128xf32> to vector<8x128xf32>
    %cst_47 = arith.constant dense<0.000000e+00> : vector<8x128xf32>
    %75 = tpu.matmul %72, %4, %cst_47 {dimension_numbers = #tpu.dot_dimension_numbers<[1], [0], [0], [1], [0, 0, 1, 1], [], []>} : vector<8x128xf32>, vector<128x128xf32>, vector<8x128xf32> -> vector<8x128xf32>
    %76 = arith.addf %74, %75 : vector<8x128xf32>
    %77 = math.tanh %76 : vector<8x128xf32>
    %c5_48 = arith.constant 5 : index
    %c0_49 = arith.constant 0 : index
    %c0_50 = arith.constant 0 : index
    %78 = vector.load %arg7[%c5_48, %c0_49, %c0_50] : memref<8x8x128xf32, #tpu.memory_space<vmem>>, vector<1x8x128xf32>
    %79 = vector.shape_cast %78 : vector<1x8x128xf32> to vector<8x128xf32>
    %cst_51 = arith.constant dense<0.000000e+00> : vector<8x128xf32>
    %80 = tpu.matmul %77, %4, %cst_51 {dimension_numbers = #tpu.dot_dimension_numbers<[1], [0], [0], [1], [0, 0, 1, 1], [], []>} : vector<8x128xf32>, vector<128x128xf32>, vector<8x128xf32> -> vector<8x128xf32>
    %81 = arith.addf %79, %80 : vector<8x128xf32>
    %82 = math.tanh %81 : vector<8x128xf32>
    %c6_52 = arith.constant 6 : index
    %c0_53 = arith.constant 0 : index
    %c0_54 = arith.constant 0 : index
    %83 = vector.load %arg7[%c6_52, %c0_53, %c0_54] : memref<8x8x128xf32, #tpu.memory_space<vmem>>, vector<1x8x128xf32>
    %84 = vector.shape_cast %83 : vector<1x8x128xf32> to vector<8x128xf32>
    %cst_55 = arith.constant dense<0.000000e+00> : vector<8x128xf32>
    %85 = tpu.matmul %82, %4, %cst_55 {dimension_numbers = #tpu.dot_dimension_numbers<[1], [0], [0], [1], [0, 0, 1, 1], [], []>} : vector<8x128xf32>, vector<128x128xf32>, vector<8x128xf32> -> vector<8x128xf32>
    %86 = arith.addf %84, %85 : vector<8x128xf32>
    %87 = math.tanh %86 : vector<8x128xf32>
    %c7_56 = arith.constant 7 : index
    %c0_57 = arith.constant 0 : index
    %c0_58 = arith.constant 0 : index
    %88 = vector.load %arg7[%c7_56, %c0_57, %c0_58] : memref<8x8x128xf32, #tpu.memory_space<vmem>>, vector<1x8x128xf32>
    %89 = vector.shape_cast %88 : vector<1x8x128xf32> to vector<8x128xf32>
    %cst_59 = arith.constant dense<0.000000e+00> : vector<8x128xf32>
    %90 = tpu.matmul %87, %4, %cst_59 {dimension_numbers = #tpu.dot_dimension_numbers<[1], [0], [0], [1], [0, 0, 1, 1], [], []>} : vector<8x128xf32>, vector<128x128xf32>, vector<8x128xf32> -> vector<8x128xf32>
    %91 = arith.addf %89, %90 : vector<8x128xf32>
    %92 = math.tanh %91 : vector<8x128xf32>
    %c0_60 = arith.constant 0 : index
    %c0_61 = arith.constant 0 : index
    %93 = vector.load %arg6[%c0_60, %c0_61] : memref<8x128xf32, #tpu.memory_space<vmem>>, vector<8x128xf32>
    tpu.vector_store %arg6[%c0_60, %c0_61], %92 {strides = array<i32>} : memref<8x128xf32, #tpu.memory_space<vmem>>, vector<8x128xf32>,
    return
  }
  func.func @transform_0(%arg0: i32, %arg1: i32) -> (i32, i32, i32) {
    %c0_i32 = arith.constant 0 : i32
    %c0_i32_0 = arith.constant 0 : i32
    return %arg0, %arg1, %c0_i32 : i32, i32, i32
  }
  func.func @transform_1(%arg0: i32, %arg1: i32) -> (i32, i32) {
    %c0_i32 = arith.constant 0 : i32
    %c0_i32_0 = arith.constant 0 : i32
    %c0_i32_1 = arith.constant 0 : i32
    return %c0_i32, %c0_i32_0 : i32, i32
  }
  func.func @transform_2(%arg0: i32, %arg1: i32) -> (i32, i32) {
    %c0_i32 = arith.constant 0 : i32
    %c0_i32_0 = arith.constant 0 : i32
    %c0_i32_1 = arith.constant 0 : i32
    return %c0_i32, %c0_i32_0 : i32, i32
  }
  func.func @transform_3(%arg0: i32, %arg1: i32) -> (i32, i32) {
    %c0_i32 = arith.constant 0 : i32
    %c0_i32_0 = arith.constant 0 : i32
    %c0_i32_1 = arith.constant 0 : i32
    return %c0_i32, %c0_i32_0 : i32, i32
  }
  func.func @transform_4(%arg0: i32, %arg1: i32) -> (i32, i32) {
    %c0_i32 = arith.constant 0 : i32
    %c0_i32_0 = arith.constant 0 : i32
    return %arg0, %c0_i32 : i32, i32
  }
}

</mosaic_0001>

<bundles_post_ra>
// kernel: tpu_custom_call.1
= control target key start
LH: loop header
LB: loop body
LE: loop exit
PB: predicated region body
PF: predicated region fallthrough
CT: control target
= control target key end

     0   :  { %9 = vsyncpa [#allocation4], 0  ;;  %s849_s0 = inlined_call_operand.hbm [shape: f32[8,8,128], index: 0, kind: input, shape index: {}]   ;;  %s850_s1 = inlined_call_operand.hbm [shape: f32[128,128], index: 1, kind: input, shape index: {}]   ;;  %s851_s2 = inlined_call_operand.hbm [shape: f32[128,128], index: 2, kind: input, shape index: {}]   ;;  %s852_s3 = inlined_call_operand.vmem [shape: f32[1,128], index: 3, kind: input, shape index: {}]   ;;  %s853_s4 = inlined_call_operand.hbm [shape: f32[8,128], index: 4, kind: output, shape index: {}]  }
   0x1   :  { %10 = vsyncpa [#allocation7], 0 }
   0x2   :  { %11 = vsyncpa [#allocation5], 0  ;;  %s29_s17 = sshll.u32 %s850_s1, 4  ;;  %s593_s18 = smov [#allocation6]   ;;  %s30_s17 = int_to_ptr.hbm [resolvable:$true] %s29_s17 }
   0x3   :  { %s31_s19 = sshll.u32 %s593_s18, 4  ;;  %s16_s22 = sshll.u32 %s849_s0, 4  ;;  %s32_s19 = int_to_ptr.vmem [resolvable:$true] %s31_s19  ;;  %s17_s22 = int_to_ptr.hbm [resolvable:$true] %s16_s22 }
   0x4   :  { %s594_s23 = smov 128   ;;  %s595_s24 = smov 8  }
   0x5   :  { %37 = dma.hbm_to_vmem [thread:$0]  %s30_s17, 2048, %s32_s19, [#allocation7], %s594_s23, %s594_s23, %s595_s24  }
   0x6   :  { %s596_s25 = smov [#allocation3]   ;;  %s42_s29 = sshll.u32 %s851_s2, 4  ;;  %s43_s29 = int_to_ptr.hbm [resolvable:$true] %s42_s29 }
   0x7   :  { %s18_s26 = sshll.u32 %s596_s25, 4  ;;  %s597_s1 = smov [#allocation8]   ;;  %s19_s26 = int_to_ptr.vmem [resolvable:$true] %s18_s26 }
   0x8   :  { %24 = dma.hbm_to_vmem [thread:$0]  %s17_s22, 1024, %s19_s26, [#allocation4], %s594_s23, %s594_s23, %s595_s24  }
   0x9   :  { %s44_s30 = sshll.u32 %s597_s1, 4  ;;  %s45_s30 = int_to_ptr.vmem [resolvable:$true] %s44_s30 }
   0xa   :  { %50 = dma.hbm_to_vmem [thread:$0]  %s43_s29, 2048, %s45_s30, [#allocation7], %s594_s23, %s594_s23, %s595_s24  }
   0xb   :  { %587 = dma.done.wait [#allocation4], 1024  }
   0xc   :  { %588 = vsyncadd [#allocation4], 4294966272 }
   0xd   :  { %589 = dma.done.wait [#allocation7], 4096  }
   0xe   :  { %590 = vsyncadd [#allocation7], 4294963200  ;;  %v85_v0 = vld [vmem:[#allocation6 + $0x78] sm:$0xff]  ;;  %v84_v1 = vld [vmem:[#allocation6 + $0x70] sm:$0xff]  ;;  %v598_v37 = vmov 0.0   ;;  %vm182_vm0 = vcmask 1047559  }
   0xf   :  { %114 = vmatpush.msra.mxu0 %v85_v0  ;;  %v83_v2 = vld [vmem:[#allocation6 + $0x68] sm:$0xff]  ;;  %v82_v3 = vld [vmem:[#allocation6 + $0x60] sm:$0xff]  ;;  %v81_v4 = vld [vmem:[#allocation6 + $0x58] sm:$0xff]  ;;  %vm179_vm1 = vcmask 1046534   ;;  %vm176_vm2 = vcmask 1045509   ;;  %vm173_vm3 = vcmask 1044484  }
  0x10   :  { %v80_v5 = vld [vmem:[#allocation6 + $0x50] sm:$0xff]  ;;  %v79_v6 = vld [vmem:[#allocation6 + $0x48] sm:$0xff]  ;;  %v78_v7 = vld [vmem:[#allocation6 + $0x40] sm:$0xff]  ;;  %vm170_vm4 = vcmask 1043459   ;;  %vm167_vm5 = vcmask 1042434   ;;  %vm164_vm6 = vcmask 1041409  }
  0x11   :  { %115 = vmatpush.msra.mxu0 %v84_v1  ;;  %v77_v8 = vld [vmem:[#allocation6 + $0x38] sm:$0xff]  ;;  %v76_v9 = vld [vmem:[#allocation6 + $0x30] sm:$0xff]  ;;  %v75_v10 = vld [vmem:[#allocation6 + $0x28] sm:$0xff]  ;;  %s456_s8 = sshll.u32 %s853_s4, 4  ;;  %s457_s8 = int_to_ptr.hbm [resolvable:$true] %s456_s8 }
  0x12   :  { %v74_v11 = vld [vmem:[#allocation6 + $0x20] sm:$0xff]  ;;  %v73_v12 = vld [vmem:[#allocation6 + $0x18] sm:$0xff]  ;;  %v72_v13 = vld [vmem:[#allocation6 + $0x10] sm:$0xff] }
  0x13   :  { %116 = vmatpush.msra.mxu0 %v83_v2  ;;  %v71_v14 = vld [vmem:[#allocation6 + $0x8] sm:$0xff]  ;;  %v70_v15 = vld [vmem:[#allocation6] sm:$0xff]  ;;  %v634_v17 = vld [vmem:[#allocation8 + $0x78] sm:$0xff] }
  0x14   :  { %v103_v16 = vld [vmem:[#allocation3] sm:$0xff]  ;;  %265 = vmatpush.msra.mxu1 %v634_v17  ;;  %288 = vmatpush.msra.mxu2 %v634_v17  ;;  %v638_v18 = vld [vmem:[#allocation8 + $0x70] sm:$0xff]  ;;  %v642_v19 = vld [vmem:[#allocation8 + $0x68] sm:$0xff] }
  0x15   :  { %117 = vmatpush.msra.mxu0 %v82_v3  ;;  %311 = vmatpush.msra.mxu3 %v634_v17  ;;  %v648_v20 = vld [vmem:[#allocation8 + $0x60] sm:$0xff]  ;;  %v104_v21 = vld [vmem:[#allocation3 + $0x8] sm:$0xff]  ;;  %v654_v22 = vld [vmem:[#allocation8 + $0x58] sm:$0xff] }
  0x16   :  { %266 = vmatpush.msra.mxu1 %v638_v18  ;;  %289 = vmatpush.msra.mxu2 %v638_v18  ;;  %v660_v23 = vld [vmem:[#allocation8 + $0x50] sm:$0xff]  ;;  %v665_v24 = vld [vmem:[#allocation8 + $0x48] sm:$0xff]  ;;  %v671_v25 = vld [vmem:[#allocation8 + $0x40] sm:$0xff] }
  0x17   :  { %118 = vmatpush.msra.mxu0 %v81_v4  ;;  %312 = vmatpush.msra.mxu3 %v638_v18  ;;  %v105_v26 = vld [vmem:[#allocation3 + $0x10] sm:$0xff]  ;;  %v677_v27 = vld [vmem:[#allocation8 + $0x38] sm:$0xff]  ;;  %v688_v29 = vld [vmem:[#allocation8 + $0x28] sm:$0xff] }
  0x18   :  { %267 = vmatpush.msra.mxu1 %v642_v19  ;;  %290 = vmatpush.msra.mxu2 %v642_v19  ;;  %v683_v28 = vld [vmem:[#allocation8 + $0x30] sm:$0xff]  ;;  %v694_v30 = vld [vmem:[#allocation8 + $0x20] sm:$0xff]  ;;  %v106_v31 = vld [vmem:[#allocation3 + $0x18] sm:$0xff] }
  0x19   :  { %119 = vmatpush.msra.mxu0 %v80_v5  ;;  %313 = vmatpush.msra.mxu3 %v642_v19  ;;  %v700_v32 = vld [vmem:[#allocation8 + $0x18] sm:$0xff]  ;;  %v706_v33 = vld [vmem:[#allocation8 + $0x10] sm:$0xff]  ;;  %v711_v34 = vld [vmem:[#allocation8 + $0x8] sm:$0xff] }
  0x1a   :  { %268 = vmatpush.msra.mxu1 %v648_v20  ;;  %291 = vmatpush.msra.mxu2 %v648_v20  ;;  %v713_v35 = vld [vmem:[#allocation8] sm:$0xff]  ;;  %v108_v38 = vld [vmem:[#allocation3 + $0x28] sm:$0xff]  ;;  %v109_v39 = vld [vmem:[#allocation3 + $0x30] sm:$0xff] }
  0x1b   :  { %120 = vmatpush.msra.mxu0 %v79_v6  ;;  %314 = vmatpush.msra.mxu3 %v648_v20  ;;  %v107_v36 = vld [vmem:[#allocation3 + $0x20] sm:$0xff]  ;;  %v110_v40 = vld [vmem:[#allocation3 + $0x38] sm:$0xff] }
  0x1c   :  { %269 = vmatpush.msra.mxu1 %v654_v22  ;;  %292 = vmatpush.msra.mxu2 %v654_v22  ;;  %v474_v41 = vld [vmem:[%s852_s3] ss:$0 sm:$0xff]  ;;  %s599_s3 = smov [#allocation9]  }
  0x1d   :  { %121 = vmatpush.msra.mxu0 %v78_v7  ;;  %315 = vmatpush.msra.mxu3 %v654_v22  ;;  %s454_s5 = sshll.u32 %s599_s3, 4  ;;  %s455_s5 = int_to_ptr.vmem [resolvable:$true] %s454_s5 }
  0x1e   :  { %270 = vmatpush.msra.mxu1 %v660_v23  ;;  %293 = vmatpush.msra.mxu2 %v660_v23 }
  0x1f   :  { %122 = vmatpush.msra.mxu0 %v77_v8  ;;  %316 = vmatpush.msra.mxu3 %v660_v23 }
  0x20   :  { %271 = vmatpush.msra.mxu1 %v665_v24  ;;  %294 = vmatpush.msra.mxu2 %v665_v24 }
  0x21   :  { %123 = vmatpush.msra.mxu0 %v76_v9  ;;  %317 = vmatpush.msra.mxu3 %v665_v24 }
  0x22   :  { %272 = vmatpush.msra.mxu1 %v671_v25  ;;  %295 = vmatpush.msra.mxu2 %v671_v25 }
  0x23   :  { %124 = vmatpush.msra.mxu0 %v75_v10  ;;  %318 = vmatpush.msra.mxu3 %v671_v25 }
  0x24   :  { %273 = vmatpush.msra.mxu1 %v677_v27  ;;  %296 = vmatpush.msra.mxu2 %v677_v27 }
  0x25   :  { %125 = vmatpush.msra.mxu0 %v74_v11  ;;  %319 = vmatpush.msra.mxu3 %v677_v27 }
  0x26   :  { %274 = vmatpush.msra.mxu1 %v683_v28  ;;  %297 = vmatpush.msra.mxu2 %v683_v28 }
  0x27   :  { %126 = vmatpush.msra.mxu0 %v73_v12  ;;  %320 = vmatpush.msra.mxu3 %v683_v28 }
  0x28   :  { %275 = vmatpush.msra.mxu1 %v688_v29  ;;  %298 = vmatpush.msra.mxu2 %v688_v29 }
  0x29   :  { %127 = vmatpush.msra.mxu0 %v72_v13  ;;  %321 = vmatpush.msra.mxu3 %v688_v29 }
  0x2a   :  { %276 = vmatpush.msra.mxu1 %v694_v30  ;;  %299 = vmatpush.msra.mxu2 %v694_v30 }
  0x2b   :  { %128 = vmatpush.msra.mxu0 %v71_v14  ;;  %322 = vmatpush.msra.mxu3 %v694_v30 }
  0x2c   :  { %277 = vmatpush.msra.mxu1 %v700_v32  ;;  %300 = vmatpush.msra.mxu2 %v700_v32 }
  0x2d   :  { %129 = vmatpush.msra.mxu0 %v70_v15  ;;  %323 = vmatpush.msra.mxu3 %v700_v32 }
  0x2e   :  { %130 = vmatmul.f32.vlgmr.msra.gmra.mxu0 %v103_v16  ;;  %278 = vmatpush.msra.mxu1 %v706_v33 }
  0x2f   :  { %403 = vmatpush.msrb.mxu0 %v634_v17  ;;  %301 = vmatpush.msra.mxu2 %v706_v33 }
  0x30   :  { %324 = vmatpush.msra.mxu3 %v706_v33  ;;  %279 = vmatpush.msra.mxu1 %v711_v34 }
  0x31   :  { %404 = vmatpush.msrb.mxu0 %v638_v18  ;;  %302 = vmatpush.msra.mxu2 %v711_v34 }
  0x32   :  { %325 = vmatpush.msra.mxu3 %v711_v34  ;;  %280 = vmatpush.msra.mxu1 %v713_v35 }
  0x33   :  { %405 = vmatpush.msrb.mxu0 %v642_v19  ;;  %281 = vmatmul.f32.vlgmr.msra.gmra.mxu1 %v598_v37 }
  0x34   :  { %303 = vmatpush.msra.mxu2 %v713_v35  ;;  %326 = vmatpush.msra.mxu3 %v713_v35 }
  0x35   :  { %406 = vmatpush.msrb.mxu0 %v648_v20  ;;  %334 = vmatpush.msrb.mxu1 %v634_v17 }
  0x36   :  { %133 = vmatmul.f32.gmra.mxu0 %v104_v21  ;;  %357 = vmatpush.msrb.mxu2 %v634_v17 }
  0x37   :  { %407 = vmatpush.msrb.mxu0 %v654_v22  ;;  %380 = vmatpush.msrb.mxu3 %v634_v17 }
  0x38   :  { %335 = vmatpush.msrb.mxu1 %v638_v18  ;;  %358 = vmatpush.msrb.mxu2 %v638_v18 }
  0x39   :  { %408 = vmatpush.msrb.mxu0 %v660_v23  ;;  %381 = vmatpush.msrb.mxu3 %v638_v18 }
  0x3a   :  { %336 = vmatpush.msrb.mxu1 %v642_v19  ;;  %359 = vmatpush.msrb.mxu2 %v642_v19 }
  0x3b   :  { %409 = vmatpush.msrb.mxu0 %v665_v24  ;;  %382 = vmatpush.msrb.mxu3 %v642_v19 }
  0x3c   :  { %337 = vmatpush.msrb.mxu1 %v648_v20  ;;  %360 = vmatpush.msrb.mxu2 %v648_v20 }
  0x3d   :  { %410 = vmatpush.msrb.mxu0 %v671_v25  ;;  %383 = vmatpush.msrb.mxu3 %v648_v20 }
  0x3e   :  { %136 = vmatmul.f32.gmra.mxu0 %v105_v26  ;;  %338 = vmatpush.msrb.mxu1 %v654_v22 }
  0x3f   :  { %411 = vmatpush.msrb.mxu0 %v677_v27  ;;  %361 = vmatpush.msrb.mxu2 %v654_v22 }
  0x40   :  { %384 = vmatpush.msrb.mxu3 %v654_v22  ;;  %339 = vmatpush.msrb.mxu1 %v660_v23 }
  0x41   :  { %412 = vmatpush.msrb.mxu0 %v683_v28  ;;  %362 = vmatpush.msrb.mxu2 %v660_v23 }
  0x42   :  { %385 = vmatpush.msrb.mxu3 %v660_v23  ;;  %340 = vmatpush.msrb.mxu1 %v665_v24 }
  0x43   :  { %413 = vmatpush.msrb.mxu0 %v688_v29  ;;  %363 = vmatpush.msrb.mxu2 %v665_v24 }
  0x44   :  { %386 = vmatpush.msrb.mxu3 %v665_v24  ;;  %341 = vmatpush.msrb.mxu1 %v671_v25 }
  0x45   :  { %414 = vmatpush.msrb.mxu0 %v694_v30  ;;  %364 = vmatpush.msrb.mxu2 %v671_v25 }
  0x46   :  { %139 = vmatmul.f32.gmra.mxu0 %v106_v31  ;;  %387 = vmatpush.msrb.mxu3 %v671_v25 }
  0x47   :  { %415 = vmatpush.msrb.mxu0 %v700_v32  ;;  %342 = vmatpush.msrb.mxu1 %v677_v27 }
  0x48   :  { %365 = vmatpush.msrb.mxu2 %v677_v27  ;;  %388 = vmatpush.msrb.mxu3 %v677_v27 }
  0x49   :  { %416 = vmatpush.msrb.mxu0 %v706_v33  ;;  %343 = vmatpush.msrb.mxu1 %v683_v28 }
  0x4a   :  { %366 = vmatpush.msrb.mxu2 %v683_v28  ;;  %389 = vmatpush.msrb.mxu3 %v683_v28 }
  0x4b   :  { %417 = vmatpush.msrb.mxu0 %v711_v34  ;;  %344 = vmatpush.msrb.mxu1 %v688_v29 }
  0x4c   :  { %367 = vmatpush.msrb.mxu2 %v688_v29  ;;  %390 = vmatpush.msrb.mxu3 %v688_v29 }
  0x4d   :  { %418 = vmatpush.msrb.mxu0 %v713_v35  ;;  %345 = vmatpush.msrb.mxu1 %v694_v30 }
  0x4e   :  { %142 = vmatmul.f32.gmra.mxu0 %v107_v36  ;;  %368 = vmatpush.msrb.mxu2 %v694_v30 }
  0x4f   :  { %391 = vmatpush.msrb.mxu3 %v694_v30  ;;  %346 = vmatpush.msrb.mxu1 %v700_v32 }
  0x50   :  { %369 = vmatpush.msrb.mxu2 %v700_v32 }
  0x51   :  { %392 = vmatpush.msrb.mxu3 %v700_v32  ;;  %347 = vmatpush.msrb.mxu1 %v706_v33 }
  0x52   :  { %370 = vmatpush.msrb.mxu2 %v706_v33 }
  0x53   :  { %393 = vmatpush.msrb.mxu3 %v706_v33  ;;  %348 = vmatpush.msrb.mxu1 %v711_v34 }
  0x54   :  { %371 = vmatpush.msrb.mxu2 %v711_v34 }
  0x55   :  { %394 = vmatpush.msrb.mxu3 %v711_v34  ;;  %349 = vmatpush.msrb.mxu1 %v713_v35 }
  0x56   :  { %145 = vmatmul.f32.gmra.mxu0 %v108_v38  ;;  %372 = vmatpush.msrb.mxu2 %v713_v35 }
  0x57   :  { %395 = vmatpush.msrb.mxu3 %v713_v35  ;;  %426 = vmatpush.msra.mxu1 %v634_v17 }
  0x59   :  { %427 = vmatpush.msra.mxu1 %v638_v18 }
  0x5b   :  { %428 = vmatpush.msra.mxu1 %v642_v19 }
  0x5d   :  { %429 = vmatpush.msra.mxu1 %v648_v20 }
  0x5e   :  { %148 = vmatmul.f32.gmra.mxu0 %v109_v39 }
  0x5f   :  { %430 = vmatpush.msra.mxu1 %v654_v22 }
  0x61   :  { %431 = vmatpush.msra.mxu1 %v660_v23 }
  0x63   :  { %432 = vmatpush.msra.mxu1 %v665_v24 }
  0x65   :  { %433 = vmatpush.msra.mxu1 %v671_v25 }
  0x66   :  { %151 = vmatmul.f32.gmra.mxu0 %v110_v40 }
  0x67   :  { %434 = vmatpush.msra.mxu1 %v677_v27 }
  0x69   :  { %435 = vmatpush.msra.mxu1 %v683_v28 }
  0x6b   :  { %436 = vmatpush.msra.mxu1 %v688_v29 }
  0x6d   :  { %437 = vmatpush.msra.mxu1 %v694_v30 }
  0x6f   :  { %438 = vmatpush.msra.mxu1 %v700_v32 }
  0x71   :  { %439 = vmatpush.msra.mxu1 %v706_v33 }
  0x73   :  { %440 = vmatpush.msra.mxu1 %v711_v34 }
  0x75   :  { %441 = vmatpush.msra.mxu1 %v713_v35 }
  0xab   :  { %v131_v42 = vpop.f32.mrf.mxu0 }
  0xac   :  { %v132_v43 = vadd.f32 %v474_v41, %v131_v42 }
  0xae   :  { %261 = vst [vmem:[#allocation2 + $0x31] sm:$0x80] %v132_v43 }
  0xb0   :  { %v282_v33 = vpop.f32.mrf.mxu1 }
  0xb3   :  { %v134_v44 = vpop.f32.mrf.mxu0 }
  0xb4   :  { %v135_v45 = vadd.f32 %v474_v41, %v134_v44 }
  0xb6   :  { %v163_v46 = vrot.slane %v135_v45, 7 }
  0xb8   :  { %v241_v47 = vsel %vm182_vm0, %v163_v46, %v132_v43  ;;  %v230_v51 = vsel %vm179_vm1, %v163_v46, %v132_v43  ;;  %v219_v56 = vsel %vm176_vm2, %v163_v46, %v132_v43  ;;  %v208_v61 = vsel %vm173_vm3, %v163_v46, %v132_v43 }
  0xb9   :  { %250 = vst [vmem:[#allocation2 + $0x2a] sm:$0xc0] %v241_v47  ;;  %v197_v3 = vsel %vm170_vm4, %v163_v46, %v132_v43  ;;  %v186_v10 = vsel %vm167_vm5, %v163_v46, %v132_v43  ;;  %v165_v19 = vsel %vm164_vm6, %v163_v46, %v132_v43 }
  0xbb   :  { %v137_v48 = vpop.f32.mrf.mxu0 }
  0xbc   :  { %v138_v49 = vadd.f32 %v474_v41, %v137_v48 }
  0xbe   :  { %v166_v50 = vrot.slane %v138_v49, 6 }
  0xc0   :  { %v231_v52 = vsel %vm182_vm0, %v166_v50, %v230_v51  ;;  %v220_v57 = vsel %vm179_vm1, %v166_v50, %v219_v56  ;;  %v209_v62 = vsel %vm176_vm2, %v166_v50, %v208_v61  ;;  %v198_v5 = vsel %vm173_vm3, %v166_v50, %v197_v3 }
  0xc1   :  { %239 = vst [vmem:[#allocation2 + $0x23] sm:$0xe0] %v231_v52  ;;  %v187_v12 = vsel %vm170_vm4, %v166_v50, %v186_v10  ;;  %v168_v20 = vsel %vm167_vm5, %v166_v50, %v165_v19  ;;  %v252_v22 = vsel %vm164_vm6, %v166_v50, %v163_v46 }
  0xc3   :  { %v140_v53 = vpop.f32.mrf.mxu0 }
  0xc4   :  { %v141_v54 = vadd.f32 %v474_v41, %v140_v53 }
  0xc6   :  { %v169_v55 = vrot.slane %v141_v54, 5 }
  0xc8   :  { %v221_v58 = vsel %vm182_vm0, %v169_v55, %v220_v57  ;;  %v210_v0 = vsel %vm179_vm1, %v169_v55, %v209_v62  ;;  %v199_v6 = vsel %vm176_vm2, %v169_v55, %v198_v5  ;;  %v188_v14 = vsel %vm173_vm3, %v169_v55, %v187_v12 }
  0xc9   :  { %228 = vst [vmem:[#allocation2 + $0x1c] sm:$0xf0] %v221_v58  ;;  %v171_v23 = vsel %vm170_vm4, %v169_v55, %v168_v20  ;;  %v242_v25 = vsel %vm164_vm6, %v169_v55, %v166_v50  ;;  %v253_v26 = vsel %vm167_vm5, %v169_v55, %v252_v22 }
  0xcb   :  { %v143_v59 = vpop.f32.mrf.mxu0 }
  0xcc   :  { %v144_v60 = vadd.f32 %v474_v41, %v143_v59 }
  0xce   :  { %v172_v63 = vrot.slane %v144_v60, 4 }
  0xd0   :  { %v211_v1 = vsel %vm182_vm0, %v172_v63, %v210_v0  ;;  %v200_v8 = vsel %vm179_vm1, %v172_v63, %v199_v6  ;;  %v189_v15 = vsel %vm176_vm2, %v172_v63, %v188_v14  ;;  %v174_v27 = vsel %vm173_vm3, %v172_v63, %v171_v23 }
  0xd1   :  { %217 = vst [vmem:[#allocation2 + $0x15] sm:$0xf8] %v211_v1  ;;  %v232_v28 = vsel %vm164_vm6, %v172_v63, %v169_v55  ;;  %v243_v29 = vsel %vm167_vm5, %v172_v63, %v242_v25  ;;  %v254_v30 = vsel %vm170_vm4, %v172_v63, %v253_v26 }
  0xd3   :  { %v146_v2 = vpop.f32.mrf.mxu0 }
  0xd4   :  { %v147_v4 = vadd.f32 %v474_v41, %v146_v2 }
  0xd6   :  { %v175_v7 = vrot.slane %v147_v4, 3 }
  0xd8   :  { %v201_v9 = vsel %vm182_vm0, %v175_v7, %v200_v8  ;;  %v190_v17 = vsel %vm179_vm1, %v175_v7, %v189_v15  ;;  %v177_v31 = vsel %vm176_vm2, %v175_v7, %v174_v27  ;;  %v222_v34 = vsel %vm164_vm6, %v175_v7, %v172_v63 }
  0xd9   :  { %206 = vst [vmem:[#allocation2 + $0xe] sm:$0xfc] %v201_v9  ;;  %v233_v35 = vsel %vm167_vm5, %v175_v7, %v232_v28  ;;  %v244_v42 = vsel %vm170_vm4, %v175_v7, %v243_v29  ;;  %v255_v46 = vsel %vm173_vm3, %v175_v7, %v254_v30 }
  0xdb   :  { %v149_v11 = vpop.f32.mrf.mxu0 }
  0xdc   :  { %v150_v13 = vadd.f32 %v474_v41, %v149_v11 }
  0xde   :  { %v178_v16 = vrot.slane %v150_v13, 2 }
  0xe0   :  { %v191_v18 = vsel %vm182_vm0, %v178_v16, %v190_v17  ;;  %v180_v36 = vsel %vm179_vm1, %v178_v16, %v177_v31  ;;  %v212_v37 = vsel %vm164_vm6, %v178_v16, %v175_v7  ;;  %v223_v38 = vsel %vm167_vm5, %v178_v16, %v222_v34 }
  0xe1   :  { %195 = vst [vmem:[#allocation2 + $0x7] sm:$0xfe] %v191_v18  ;;  %v234_v43 = vsel %vm170_vm4, %v178_v16, %v233_v35  ;;  %v245_v47 = vsel %vm173_vm3, %v178_v16, %v244_v42  ;;  %v256_v49 = vsel %vm176_vm2, %v178_v16, %v255_v46 }
  0xe3   :  { %v152_v21 = vpop.f32.mrf.mxu0 }
  0xe4   :  { %v153_v24 = vadd.f32 %v474_v41, %v152_v21 }
  0xe6   :  { %v181_v32 = vrot.slane %v153_v24, 1 }
  0xe8   :  { %v183_v39 = vsel %vm182_vm0, %v181_v32, %v180_v36  ;;  %196 = vst [vmem:[#allocation2 + $0xf] sm:$0x1] %v181_v32  ;;  %v202_v40 = vsel %vm164_vm6, %v181_v32, %v178_v16  ;;  %v213_v41 = vsel %vm167_vm5, %v181_v32, %v212_v37  ;;  %v224_v44 = vsel %vm170_vm4, %v181_v32, %v223_v38 }
  0xe9   :  { %v285_v45 = vadd.f32 %v282_v33, %v183_v39  ;;  %v235_v48 = vsel %vm173_vm3, %v181_v32, %v234_v43  ;;  %207 = vst [vmem:[#allocation2 + $0x16] sm:$0x3] %v202_v40  ;;  %v246_v50 = vsel %vm176_vm2, %v181_v32, %v245_v47  ;;  %v257_v51 = vsel %vm179_vm1, %v181_v32, %v256_v49 }
  0xea   :  { %218 = vst [vmem:[#allocation2 + $0x1d] sm:$0x7] %v213_v41 }
  0xeb   :  { %475 = vtanh.f32 %v285_v45  ;;  %229 = vst [vmem:[#allocation2 + $0x24] sm:$0xf] %v224_v44 }
  0xec   :  { %240 = vst [vmem:[#allocation2 + $0x2b] sm:$0x1f] %v235_v48 }
  0xed   :  { %251 = vst [vmem:[#allocation2 + $0x32] sm:$0x3f] %v246_v50 }
  0xee   :  { %262 = vst [vmem:[#allocation2 + $0x39] sm:$0x7f] %v257_v51 }
  0xef   :  { %v287_v53 = vld [vmem:[#allocation2 + $0x8] sm:$0xff] }
  0xf0   :  { %v310_v57 = vld [vmem:[#allocation2 + $0x10] sm:$0xff] }
  0xf1   :  { %v476_v52 = vpop.eup %475  ;;  %v333_v61 = vld [vmem:[#allocation2 + $0x18] sm:$0xff] }
  0xf2   :  { %304 = vmatmul.f32.vlgmr.msra.gmra.mxu2 %v476_v52  ;;  %v356_v1 = vld [vmem:[#allocation2 + $0x20] sm:$0xff] }
  0xf3   :  { %v379_v5 = vld [vmem:[#allocation2 + $0x28] sm:$0xff] }
  0xf4   :  { %v402_v9 = vld [vmem:[#allocation2 + $0x30] sm:$0xff] }
  0xf5   :  { %v425_v13 = vld [vmem:[#allocation2 + $0x38] sm:$0xff] }
 0x175   :  { %v305_v54 = vpop.f32.mrf.mxu2 }
 0x176   :  { %v308_v55 = vadd.f32 %v305_v54, %v287_v53 }
 0x178   :  { %477 = vtanh.f32 %v308_v55 }
 0x17e   :  { %v478_v56 = vpop.eup %477 }
 0x17f   :  { %327 = vmatmul.f32.vlgmr.msra.gmra.mxu3 %v478_v56 }
 0x202   :  { %v328_v58 = vpop.f32.mrf.mxu3 }
 0x203   :  { %v331_v59 = vadd.f32 %v328_v58, %v310_v57 }
 0x205   :  { %479 = vtanh.f32 %v331_v59 }
 0x20b   :  { %v480_v60 = vpop.eup %479 }
 0x20c   :  { %350 = vmatmul.f32.vlgmr.msrb.gmra.mxu1 %v480_v60 }
 0x289   :  { %v351_v62 = vpop.f32.mrf.mxu1 }
 0x28a   :  { %v354_v63 = vadd.f32 %v351_v62, %v333_v61 }
 0x28c   :  { %481 = vtanh.f32 %v354_v63 }
 0x292   :  { %v482_v0 = vpop.eup %481 }
 0x293   :  { %373 = vmatmul.f32.vlgmr.msrb.gmra.mxu2 %v482_v0 }
 0x316   :  { %v374_v2 = vpop.f32.mrf.mxu2 }
 0x317   :  { %v377_v3 = vadd.f32 %v374_v2, %v356_v1 }
 0x319   :  { %483 = vtanh.f32 %v377_v3 }
 0x31f   :  { %v484_v4 = vpop.eup %483 }
 0x320   :  { %396 = vmatmul.f32.vlgmr.msrb.gmra.mxu3 %v484_v4 }
 0x3a3   :  { %v397_v6 = vpop.f32.mrf.mxu3 }
 0x3a4   :  { %v400_v7 = vadd.f32 %v397_v6, %v379_v5 }
 0x3a6   :  { %485 = vtanh.f32 %v400_v7 }
 0x3ac   :  { %v486_v8 = vpop.eup %485 }
 0x3ad   :  { %419 = vmatmul.f32.vlgmr.msrb.gmra.mxu0 %v486_v8 }
 0x42a   :  { %v420_v10 = vpop.f32.mrf.mxu0 }
 0x42b   :  { %v423_v11 = vadd.f32 %v420_v10, %v402_v9 }
 0x42d   :  { %487 = vtanh.f32 %v423_v11 }
 0x433   :  { %v488_v12 = vpop.eup %487 }
 0x434   :  { %442 = vmatmul.f32.vlgmr.msra.gmra.mxu1 %v488_v12 }
 0x4b1   :  { %v443_v14 = vpop.f32.mrf.mxu1 }
 0x4b2   :  { %v446_v15 = vadd.f32 %v443_v14, %v425_v13 }
 0x4b4   :  { %489 = vtanh.f32 %v446_v15 }
 0x4ba   :  { %v490_v16 = vpop.eup %489 }
 0x4bb   :  { %448 = vst [vmem:[#allocation9] sm:$0xff] %v490_v16 }
 0x4bc   :  { %459 = dma.vmem_to_hbm [thread:$0]  %s455_s5, 128, %s457_s8, [#allocation5]  }
 0x4bd   :  { %591 = dma.done.wait [#allocation5], 128  }
 0x4be   :  { %592 = vsyncadd [#allocation5], 4294967168 }
 0x4bf   :  { %464 = vsyncpa [#allocation4], 1 }
 0x4c0   :  { %465 = vsyncpa [#allocation7], 1 }
 0x4c1   :  { %466 = vsyncpa [#allocation5], 1 }

</bundles_post_ra>
